<compile_context>
chip_gen: v6e
topology: v6e:2x2x1
jax: 0.10.0
libtpu: 0.0.40
codegen_flags: <defaults>
</compile_context>

<pallas_src>
import functools

import numpy as np

import jax
import jax.numpy as jnp
from jax.experimental import pallas as pl
from jax.experimental.pallas import tpu as pltpu


_VMEM_LIMIT = 32 * 1024 * 1024   # raise v5e's 16 MiB default; safe on v6e/v7x


def _round_up(x, m):
    return ((x + m - 1) // m) * m


# --------------------- pass 1: h = x @ W1 + b1 (padded) ---------------------
def _lin1_kernel(x_ref, w1_ref, b1_ref, h_ref):
    h = jnp.dot(x_ref[...], w1_ref[...], preferred_element_type=jnp.float32)
    h_ref[...] = (h + b1_ref[...]).astype(h_ref.dtype)


# ------------- pass 2: CSR-tiled scatter-mean + relu + decoder --------------
def _scatter_decode_kernel(fb_ref, nb_ref,                     # scalar prefetch (SMEM)
                           row_ref, hcol_ref, h_ref, wds_ref, wda_ref, bd_ref,
                           out_ref, acc_ref, *, out_c, tm):
    i = pl.program_id(0)          # node tile  ("parallel")
    k = pl.program_id(1)          # edge block within this node tile ("arbitrary")

    @pl.when(k == 0)
    def _():
        acc_ref[...] = jnp.zeros_like(acc_ref)

    # Only nb_ref[i] edge blocks hold edges destined to node tile i; the
    # index_map clamps the block index for k >= nb_ref[i] (no extra DMA), so
    # just skip the accumulate for those steps.
    @pl.when(k < nb_ref[i])
    def _():
        # One-hot scatter matrix: (this node tile) x (this edge block).
        # (tm,1) iota vs (1,te) row-local compare — no (tm,te) iota/add — and
        # the one-hot goes straight to bf16 (exact) for the MXU.
        row_local = row_ref[...] - i * tm                              # (1, te)
        lane_ids = jax.lax.broadcasted_iota(jnp.int32, (tm, 1), 0)     # (tm, 1)
        onehot = (lane_ids == row_local).astype(jnp.bfloat16)          # (tm, te)
        # h_col carries a ones-column at lane out_c, so a single bf16 MXU
        # matmul (f32 accumulate) produces both agg_sum (lanes < out_c) and
        # the per-node degree count (lane out_c), exactly.
        acc_ref[...] += jnp.dot(onehot, hcol_ref[...],
                                preferred_element_type=jnp.float32)

    @pl.when(k == pl.num_programs(1) - 1)
    def _():
        acc = acc_ref[...]
        count = jnp.maximum(acc[:, out_c:out_c + 1], 1.0)              # [tm, 1]
        agg = acc / count                       # exact scatter-mean divide
        h = h_ref[...]
        # relu(cat([h, agg])) @ Wd == relu(h) @ Wd_self + relu(agg) @ Wd_agg
        # (epilogue only — runs once per node tile, kept in f32)
        dec = (jnp.dot(jnp.maximum(h, 0.0), wds_ref[...],
                       preferred_element_type=jnp.float32)
               + jnp.dot(jnp.maximum(agg, 0.0), wda_ref[...],
                         preferred_element_type=jnp.float32)
               + bd_ref[...])
        out_ref[...] = dec.astype(out_ref.dtype)


def graphsage_forward(x, edge_index, params, *, tm=256, te=2048):
    """x: [N, in_c] f32, edge_index: [2, E] int32 (concrete / host-visible)."""
    n, in_c = x.shape
    out_c = params["w1"].shape[1]
    f32 = jnp.float32

    inp = _round_up(in_c, 128)             # lane-dense decoder output width
    outp = _round_up(out_c + 1, 128)       # +1 lane for the ones/degree column

    # ---- node tiling (>=2 tiles when possible so both v7x TCs get work) ----
    tm = min(tm, _round_up(n, 8))
    if _round_up(n, tm) // tm < 2 and n > 8:
        tm = _round_up((n + 1) // 2, 8)
    n_pad = _round_up(n, tm)
    num_node_tiles = n_pad // tm

    # ---- host-side edge preprocessing: sort by destination + CSR block ranges
    ei = np.asarray(jax.device_get(edge_index)).astype(np.int64)
    row_np, col_np = ei[0], ei[1]
    valid = (row_np >= 0) & (row_np < n)     # out-of-range destinations dropped
    row_np, col_np = row_np[valid], col_np[valid]
    order = np.argsort(row_np, kind="stable")
    row_s, col_s = row_np[order], col_np[order]
    e_valid = int(row_s.shape[0])

    te = min(te, _round_up(max(e_valid, 1), 128))
    e_pad = _round_up(max(e_valid, 1), te)

    row_pad = np.full((e_pad,), -1, np.int32)        # -1 sentinel never matches
    row_pad[:e_valid] = row_s
    col_pad = np.zeros((e_pad,), np.int32)
    col_pad[:e_valid] = col_s

    tile_lo = np.arange(num_node_tiles, dtype=np.int64) * tm
    starts = np.searchsorted(row_s, tile_lo, side="left")
    ends = np.searchsorted(row_s, tile_lo + tm, side="left")
    first_blk = starts // te
    last_blk = np.maximum((ends - 1) // te, first_blk)
    has_edges = ends > starts
    nblocks = np.where(has_edges, last_blk - first_blk + 1, 0).astype(np.int32)
    first_blk = np.where(has_edges, first_blk, 0).astype(np.int32)
    max_nblocks = max(1, int(nblocks.max()))

    # ---- zero-padded, lane-dense parameters / inputs ----
    x_pad = jnp.zeros((n_pad, inp), f32).at[:n, :in_c].set(x.astype(f32))
    w1 = jnp.zeros((inp, outp), f32).at[:in_c, :out_c].set(params["w1"].astype(f32))
    b1 = jnp.zeros((1, outp), f32).at[0, :out_c].set(params["b1"].astype(f32))
    b1 = b1.at[0, out_c].set(1.0)          # ones column -> degree counting
    wd = params["w_dec"].astype(f32)       # [2*out_c, in_c]
    wd_self = jnp.zeros((outp, inp), f32).at[:out_c, :in_c].set(wd[:out_c])
    wd_agg = jnp.zeros((outp, inp), f32).at[:out_c, :in_c].set(wd[out_c:])
    bd = jnp.zeros((1, inp), f32).at[0, :in_c].set(params["b_dec"].astype(f32))

    cparams = lambda sem: pltpu.CompilerParams(
        dimension_semantics=sem, vmem_limit_bytes=_VMEM_LIMIT)

    # ---- pass 1: per-node linear (one large node tile when it fits VMEM) ----
    tm1 = n_pad if n_pad <= 1024 else tm
    h_pad = pl.pallas_call(
        _lin1_kernel,
        out_shape=jax.ShapeDtypeStruct((n_pad, outp), f32),
        grid=(n_pad // tm1,),
        in_specs=[
            pl.BlockSpec((tm1, inp), lambda i: (i, 0)),
            pl.BlockSpec((inp, outp), lambda i: (0, 0)),
            pl.BlockSpec((1, outp), lambda i: (0, 0)),
        ],
        out_specs=pl.BlockSpec((tm1, outp), lambda i: (i, 0)),
        compiler_params=cparams(("parallel",)),
    )(x_pad, w1, b1)

    # ---- gather h[col] as a plain XLA row gather, materialized as bf16 ------
    # (halves the HBM bytes streamed by pass 2; the ones column stays exactly 1)
    # TODO(synk): move this gather in-kernel (scalar-prefetched DMA row gather).
    h_col = h_pad[jnp.asarray(col_pad)].astype(jnp.bfloat16)    # [e_pad, outp]

    row_2d = jnp.asarray(row_pad).reshape(1, e_pad)
    fb_arr = jnp.asarray(first_blk, dtype=jnp.int32)
    nb_arr = jnp.asarray(nblocks, dtype=jnp.int32)

    def _edge_blk(i, k, fb, nb):
        # Clamp to this node tile's own block range; for k >= nb[i] the index
        # stays put (no redundant DMA) and the kernel skips the accumulate.
        return fb[i] + jnp.minimum(k, jnp.maximum(nb[i] - 1, 0))

    # ---- pass 2: CSR-tiled one-hot scatter-mean + fused relu/decoder --------
    kernel2 = functools.partial(_scatter_decode_kernel, out_c=out_c, tm=tm)
    out_pad = pl.pallas_call(
        kernel2,
        out_shape=jax.ShapeDtypeStruct((n_pad, inp), f32),
        grid_spec=pltpu.PrefetchScalarGridSpec(
            num_scalar_prefetch=2,
            grid=(num_node_tiles, max_nblocks),
            in_specs=[
                # edge destination ids for the current edge block
                pl.BlockSpec((1, te),
                             lambda i, k, fb, nb: (0, _edge_blk(i, k, fb, nb))),
                # gathered h[col] (bf16): the only large streaming input
                # (add pipeline_mode=pl.Buffered(3) here if DMA shows exposed)
                pl.BlockSpec((te, outp),
                             lambda i, k, fb, nb: (_edge_blk(i, k, fb, nb), 0)),
                pl.BlockSpec((tm, outp), lambda i, k, fb, nb: (i, 0)),   # h (self path)
                pl.BlockSpec((outp, inp), lambda i, k, fb, nb: (0, 0)),  # decoder, self half
                pl.BlockSpec((outp, inp), lambda i, k, fb, nb: (0, 0)),  # decoder, agg half
                pl.BlockSpec((1, inp), lambda i, k, fb, nb: (0, 0)),     # decoder bias
            ],
            out_specs=pl.BlockSpec((tm, inp), lambda i, k, fb, nb: (i, 0)),
            scratch_shapes=[pltpu.VMEM((tm, outp), jnp.float32)],
        ),
        compiler_params=cparams(("parallel", "arbitrary")),
    )(fb_arr, nb_arr, row_2d, h_col, h_pad, wd_self, wd_agg, bd)

    return out_pad[:n, :in_c]


def init_params(key, in_channels, out_channels):
    """Deterministic init mimicking torch.nn.Linear.reset_parameters shapes/bounds."""
    k1, k2, k3, k4 = jax.random.split(key, 4)
    bound1 = 1.0 / (in_channels ** 0.5)
    bound2 = 1.0 / ((2 * out_channels) ** 0.5)
    return {
        "w1": jax.random.uniform(k1, (in_channels, out_channels),
                                 minval=-bound1, maxval=bound1, dtype=jnp.float32),
        "b1": jax.random.uniform(k2, (out_channels,),
                                 minval=-bound1, maxval=bound1, dtype=jnp.float32),
        "w_dec": jax.random.uniform(k3, (2 * out_channels, in_channels),
                                    minval=-bound2, maxval=bound2, dtype=jnp.float32),
        "b_dec": jax.random.uniform(k4, (in_channels,),
                                    minval=-bound2, maxval=bound2, dtype=jnp.float32),
    }


def _reference_forward(x, edge_index, params):
    """Pure-JAX reference of the PyTorch forward, for a sanity check."""
    h = x @ params["w1"] + params["b1"]
    row, col = edge_index[0], edge_index[1]
    n = x.shape[0]
    h_col = h[col]
    agg_sum = jnp.zeros((n, h.shape[1]), jnp.float32).at[row].add(h_col)
    count = jnp.zeros((n,), jnp.float32).at[row].add(1.0)
    count = jnp.maximum(count, 1.0)
    agg = agg_sum / count[:, None]
    hidden = jax.nn.relu(jnp.concatenate([h, agg], axis=1))
    return hidden @ params["w_dec"] + params["b_dec"]


if __name__ == "__main__":
    N, IN_C, OUT_C, E = 16, 8, 32, 64

    key = jax.random.PRNGKey(0)
    k_x, k_e, k_p = jax.random.split(key, 3)

    x = jax.random.normal(k_x, (N, IN_C), dtype=jnp.float32)
    edge_index = jax.random.randint(k_e, (2, E), 0, N, dtype=jnp.int32)
    params = init_params(k_p, IN_C, OUT_C)

    decoded = graphsage_forward(x, edge_index, params)
    decoded = jax.block_until_ready(decoded)

    ref = _reference_forward(x, edge_index, params)
    assert decoded.shape == (N, IN_C)
    # bf16 MXU operands on the scatter matmul (f32 accumulate, exact counts &
    # exact mean divide) -> ~1e-3 relative error vs. the f32 reference.
    assert jnp.allclose(decoded, ref, atol=1e-2, rtol=1e-2), \
        float(jnp.max(jnp.abs(decoded - ref)))

    print("KERNEL_OK")
</pallas_src>

<mosaic_0001>
module attributes {stable_mosaic.version = 11 : i64} {
  func.func @_lin1_kernel(%arg0: i32, %arg1: memref<16x128xf32, #tpu.memory_space<vmem>>, %arg2: memref<128x128xf32, #tpu.memory_space<vmem>>, %arg3: memref<1x128xf32, #tpu.memory_space<vmem>>, %arg4: memref<16x128xf32, #tpu.memory_space<vmem>>) attributes {dimension_semantics = [#tpu.dimension_semantics<parallel>], iteration_bounds = array<i64: 1>, scalar_prefetch = 0 : i64, scratch_operands = 0 : i64, tpu.core_type = #tpu.core_type<tc>, window_params = [{transform_indices = @transform_0, window_bounds = array<i64: 16, 128>}, {pipeline_mode = #tpu.pipeline_mode<synchronous>, transform_indices = @transform_1, window_bounds = array<i64: 128, 128>}, {pipeline_mode = #tpu.pipeline_mode<synchronous>, transform_indices = @transform_2, window_bounds = array<i64: 1, 128>}, {transform_indices = @transform_3, window_bounds = array<i64: 16, 128>}]} {
    %c0 = arith.constant 0 : index
    %c0_0 = arith.constant 0 : index
    %0 = vector.load %arg1[%c0, %c0_0] : memref<16x128xf32, #tpu.memory_space<vmem>>, vector<16x128xf32>
    %c0_1 = arith.constant 0 : index
    %c0_2 = arith.constant 0 : index
    %1 = vector.load %arg2[%c0_1, %c0_2] : memref<128x128xf32, #tpu.memory_space<vmem>>, vector<128x128xf32>
    %cst = arith.constant dense<0.000000e+00> : vector<16x128xf32>
    %2 = tpu.matmul %0, %1, %cst {dimension_numbers = #tpu.dot_dimension_numbers<[1], [0], [0], [1], [0, 0, 1, 1], [], []>} : vector<16x128xf32>, vector<128x128xf32>, vector<16x128xf32> -> vector<16x128xf32>
    %c0_3 = arith.constant 0 : index
    %c0_4 = arith.constant 0 : index
    %3 = vector.load %arg3[%c0_3, %c0_4] : memref<1x128xf32, #tpu.memory_space<vmem>>, vector<1x128xf32>
    %4 = vector.broadcast %3 : vector<1x128xf32> to vector<16x128xf32>
    %5 = arith.addf %2, %4 : vector<16x128xf32>
    %c0_5 = arith.constant 0 : index
    %c0_6 = arith.constant 0 : index
    %6 = vector.load %arg4[%c0_5, %c0_6] : memref<16x128xf32, #tpu.memory_space<vmem>>, vector<16x128xf32>
    tpu.vector_store %arg4[%c0_5, %c0_6], %5 {strides = array<i32>} : memref<16x128xf32, #tpu.memory_space<vmem>>, vector<16x128xf32>,
    return
  }
  func.func @transform_0(%arg0: i32) -> (i32, i32) {
    %c0_i32 = arith.constant 0 : i32
    %c0_i32_0 = arith.constant 0 : i32
    return %arg0, %c0_i32 : i32, i32
  }
  func.func @transform_1(%arg0: i32) -> (i32, i32) {
    %c0_i32 = arith.constant 0 : i32
    %c0_i32_0 = arith.constant 0 : i32
    %c0_i32_1 = arith.constant 0 : i32
    return %c0_i32, %c0_i32_0 : i32, i32
  }
  func.func @transform_2(%arg0: i32) -> (i32, i32) {
    %c0_i32 = arith.constant 0 : i32
    %c0_i32_0 = arith.constant 0 : i32
    %c0_i32_1 = arith.constant 0 : i32
    return %c0_i32, %c0_i32_0 : i32, i32
  }
  func.func @transform_3(%arg0: i32) -> (i32, i32) {
    %c0_i32 = arith.constant 0 : i32
    %c0_i32_0 = arith.constant 0 : i32
    return %arg0, %c0_i32 : i32, i32
  }
}

</mosaic_0001>

<bundles_post_ra>
// kernel: tpu_custom_call.1
= control target key start
LH: loop header
LB: loop body
LE: loop exit
PB: predicated region body
PF: predicated region fallthrough
CT: control target
= control target key end

     0   :  { %8 = vsyncpa [#allocation3], 0  ;;  %s334_s0 = inlined_call_operand.hbm [shape: f32[16,128], index: 0, kind: input, shape index: {}]   ;;  %s335_s1 = inlined_call_operand.hbm [shape: f32[128,128], index: 1, kind: input, shape index: {}]   ;;  %s336_s2 = inlined_call_operand.vmem [shape: f32[1,128], index: 2, kind: input, shape index: {}]   ;;  %s337_s3 = inlined_call_operand.hbm [shape: f32[16,128], index: 3, kind: output, shape index: {}]  }
   0x1   :  { %9 = vsyncpa [#allocation6], 0 }
   0x2   :  { %10 = vsyncpa [#allocation4], 0  ;;  %s288_s12 = smov [#allocation2]  }
   0x3   :  { %s16_s13 = sshll.u32 %s288_s12, 4  ;;  %s17_s13 = int_to_ptr.vmem [resolvable:$true] %s16_s13 }
   0x4   :  { %s230_s14 = scalar_lea.vmem %s17_s13, 256  ;;  %p235_p1 = scmp.lt.s32.totalorder %s17_s13, %s17_s13 }
   0x5   :  { %p231_p0 = scmp.ne.s32.totalorder %s17_s13, %s230_s14  ;;  %p236_p2 = scmp.lt.s32.totalorder %s230_s14, %s230_s14 }
   0x7   :  { %p237_p3 = por %p236_p2, %p235_p1 }
   0x9   :  { %p238_p4 = pnand %p237_p3, %p231_p0 }
   0xb   :  { %241 = shalt.err (!%p238_p4)
}
   0xc   :  { %s289_s15 = smov 128   ;;  %s290_s16 = smov 8  }
   0xd   :  { %22 = dma.hbm_to_vmem [thread:$0]  %s334_s0, 256, %s17_s13, [#allocation3], %s289_s15, %s289_s15, %s290_s16  }
   0xe   :  { %s291_s19 = smov [#allocation5]  }
   0xf   :  { %s28_s20 = sshll.u32 %s291_s19, 4  ;;  %s29_s20 = int_to_ptr.vmem [resolvable:$true] %s28_s20 }
  0x10   :  { %s250_s21 = scalar_lea.vmem %s29_s20, 2048  ;;  %p255_p6 = scmp.lt.s32.totalorder %s29_s20, %s29_s20 }
  0x11   :  { %p251_p5 = scmp.ne.s32.totalorder %s29_s20, %s250_s21  ;;  %p256_p7 = scmp.lt.s32.totalorder %s250_s21, %s250_s21 }
  0x13   :  { %p257_p8 = por %p256_p7, %p255_p6 }
  0x15   :  { %p258_p9 = pnand %p257_p8, %p251_p5 }
  0x17   :  { %261 = shalt.err (!%p258_p9)
}
  0x18   :  { %34 = dma.hbm_to_vmem [thread:$0]  %s335_s1, 2048, %s29_s20, [#allocation6], %s289_s15, %s289_s15, %s290_s16  }
  0x19   :  { %282 = dma.done.wait [#allocation3], 256  }
  0x1a   :  { %283 = vsyncadd [#allocation3], 4294967040 }
  0x1b   :  { %284 = dma.done.wait [#allocation6], 2048  }
  0x1c   :  { %285 = vsyncadd [#allocation6], 4294965248  ;;  %v60_v0 = vld [vmem:[#allocation5 + $0x78] sm:$0xff]  ;;  %v59_v1 = vld [vmem:[#allocation5 + $0x70] sm:$0xff]  ;;  %s292_s24 = smov [#allocation7]  }
  0x1d   :  { %182 = vmatprep.subr.mxu0 %v60_v0  ;;  %v58_v2 = vld [vmem:[#allocation5 + $0x68] sm:$0xff]  ;;  %v57_v3 = vld [vmem:[#allocation5 + $0x60] sm:$0xff]  ;;  %v43_v4 = vld [vmem:[#allocation2] sm:$0xff]  ;;  %s150_s25 = sshll.u32 %s292_s24, 4  ;;  %s151_s25 = int_to_ptr.vmem [resolvable:$true] %s150_s25 }
  0x1e   :  { %183 = vmatpush3.msra.mxu0 %v60_v0  ;;  %v56_v5 = vld [vmem:[#allocation5 + $0x58] sm:$0xff]  ;;  %214 = vmatprep.mubr.f32.mxu0 %v43_v4  ;;  %v55_v6 = vld [vmem:[#allocation5 + $0x50] sm:$0xff]  ;;  %v54_v7 = vld [vmem:[#allocation5 + $0x48] sm:$0xff]  ;;  %s262_s26 = scalar_lea.vmem %s151_s25, 256  ;;  %p267_p11 = scmp.lt.s32.totalorder %s151_s25, %s151_s25 }
  0x1f   :  { %184 = vmatprep.subr.mxu0 %v59_v1  ;;  %v53_v8 = vld [vmem:[#allocation5 + $0x40] sm:$0xff]  ;;  %v52_v9 = vld [vmem:[#allocation5 + $0x38] sm:$0xff]  ;;  %v51_v10 = vld [vmem:[#allocation5 + $0x30] sm:$0xff]  ;;  %p263_p10 = scmp.ne.s32.totalorder %s151_s25, %s262_s26  ;;  %p268_p12 = scmp.lt.s32.totalorder %s262_s26, %s262_s26 }
  0x20   :  { %185 = vmatpush3.msra.mxu0 %v59_v1  ;;  %v50_v11 = vld [vmem:[#allocation5 + $0x28] sm:$0xff]  ;;  %v49_v12 = vld [vmem:[#allocation5 + $0x20] sm:$0xff]  ;;  %v48_v13 = vld [vmem:[#allocation5 + $0x18] sm:$0xff] }
  0x21   :  { %186 = vmatprep.subr.mxu0 %v58_v2  ;;  %v47_v14 = vld [vmem:[#allocation5 + $0x10] sm:$0xff]  ;;  %v46_v15 = vld [vmem:[#allocation5 + $0x8] sm:$0xff]  ;;  %v45_v16 = vld [vmem:[#allocation5] sm:$0xff]  ;;  %p269_p13 = por %p268_p12, %p267_p11 }
  0x22   :  { %187 = vmatpush3.msra.mxu0 %v58_v2  ;;  %v44_v17 = vld [vmem:[#allocation2 + $0x8] sm:$0xff]  ;;  %v163_v18 = vld [vmem:[%s336_s2] ss:$0 sm:$0xff] }
  0x23   :  { %188 = vmatprep.subr.mxu0 %v57_v3  ;;  %p270_p0 = pnand %p269_p13, %p263_p10 }
  0x24   :  { %189 = vmatpush3.msra.mxu0 %v57_v3 }
  0x25   :  { %190 = vmatprep.subr.mxu0 %v56_v5 }
  0x26   :  { %191 = vmatpush3.msra.mxu0 %v56_v5 }
  0x27   :  { %192 = vmatprep.subr.mxu0 %v55_v6 }
  0x28   :  { %193 = vmatpush3.msra.mxu0 %v55_v6 }
  0x29   :  { %194 = vmatprep.subr.mxu0 %v54_v7 }
  0x2a   :  { %195 = vmatpush3.msra.mxu0 %v54_v7 }
  0x2b   :  { %196 = vmatprep.subr.mxu0 %v53_v8 }
  0x2c   :  { %197 = vmatpush3.msra.mxu0 %v53_v8 }
  0x2d   :  { %198 = vmatprep.subr.mxu0 %v52_v9 }
  0x2e   :  { %199 = vmatpush3.msra.mxu0 %v52_v9 }
  0x2f   :  { %200 = vmatprep.subr.mxu0 %v51_v10 }
  0x30   :  { %201 = vmatpush3.msra.mxu0 %v51_v10 }
  0x31   :  { %202 = vmatprep.subr.mxu0 %v50_v11 }
  0x32   :  { %203 = vmatpush3.msra.mxu0 %v50_v11 }
  0x33   :  { %204 = vmatprep.subr.mxu0 %v49_v12 }
  0x34   :  { %205 = vmatpush3.msra.mxu0 %v49_v12 }
  0x35   :  { %206 = vmatprep.subr.mxu0 %v48_v13 }
  0x36   :  { %207 = vmatpush3.msra.mxu0 %v48_v13 }
  0x37   :  { %208 = vmatprep.subr.mxu0 %v47_v14 }
  0x38   :  { %209 = vmatpush3.msra.mxu0 %v47_v14 }
  0x39   :  { %210 = vmatprep.subr.mxu0 %v46_v15 }
  0x3a   :  { %211 = vmatpush3.msra.mxu0 %v46_v15 }
  0x3b   :  { %212 = vmatprep.subr.mxu0 %v45_v16 }
  0x3c   :  { %213 = vmatpush3.msra.mxu0 %v45_v16 }
  0x3d   :  { %215 = vmatmul.mubr.f32.vlgmr.msra.gmra.mxu0 %v44_v17 }
  0xfd   :  { %v216_v19 = vpop.f32.mrf.mxu0 }
  0xfe   :  { %v140_v20 = vadd.f32 %v216_v19, %v163_v18 }
  0xff   :  { %v134_v21 = vpop.f32.mrf.mxu0 }
 0x100   :  { %144 = vst [vmem:[#allocation7 + $0x8] sm:$0xff] %v140_v20  ;;  %v135_v22 = vadd.f32 %v163_v18, %v134_v21 }
 0x102   :  { %143 = vst [vmem:[#allocation7] sm:$0xff] %v135_v22 }
 0x103   :  { %273 = shalt.err (!%p270_p0)
}
 0x104   :  { %156 = dma.vmem_to_hbm [thread:$0]  %s151_s25, 256, %s337_s3, [#allocation4], %s289_s15, %s289_s15, %s290_s16  }
 0x105   :  { %286 = dma.done.wait [#allocation4], 256  }
 0x106   :  { %287 = vsyncadd [#allocation4], 4294967040 }
 0x107   :  { %160 = vsyncpa [#allocation3], 1 }
 0x108   :  { %161 = vsyncpa [#allocation6], 1 }
 0x109   :  { %162 = vsyncpa [#allocation4], 1 }

</bundles_post_ra>
